<compile_context>
chip_gen: v7x
topology: tpu7x:2x2x1
jax: 0.10.0
libtpu: 0.0.40
codegen_flags: <defaults>
</compile_context>

<pallas_src>
import functools

import jax
import jax.numpy as jnp
from jax.experimental import pallas as pl
from jax.experimental.pallas import tpu as pltpu

N_ACTIONS = 18
N_INPUT = 20

H1, H2, H3 = 64, 128, 64          # fc1, fc2, fc3 output sizes
H3_PAD = 128                      # output slab: [hidden(64) | actor(18) | critic(1) | 0(45)]
ACTOR_OFF = H3                    # column 64
CRITIC_OFF = H3 + N_ACTIONS       # column 82


def _round_up(n, m):
    return ((n + m - 1) // m) * m


def _mlp_kernel(x_ref, w1_ref, b1_ref, w2_ref, b2_ref, w3_ref, b3_ref,
                wh_ref, bh_ref, o_ref):
    """Fused MLP: three bf16 MXU matmuls (f32 acc) + packed head matmul.

    wh is (64, 128) = [I_64 | actor.T | critic.T | 0]; its identity block passes
    ReLU(fc3) through untouched, so one lane-dense (tb, 128) bf16 store covers
    both forward() and the heads."""
    x = x_ref[...].astype(jnp.bfloat16)                                   # (tb, 20)
    h = jnp.dot(x, w1_ref[...], preferred_element_type=jnp.float32) + b1_ref[...]
    h = jnp.maximum(h, 0.0)                                               # (tb, 64) f32
    h = jnp.dot(h.astype(jnp.bfloat16), w2_ref[...],
                preferred_element_type=jnp.float32) + b2_ref[...]
    h = jnp.maximum(h, 0.0)                                               # (tb, 128) f32
    h = jnp.dot(h.astype(jnp.bfloat16), w3_ref[...],
                preferred_element_type=jnp.float32) + b3_ref[...]
    h3 = jnp.maximum(h, 0.0)                                              # (tb, 64) f32 == forward()
    out = jnp.dot(h3.astype(jnp.bfloat16), wh_ref[...],
                  preferred_element_type=jnp.float32) + bh_ref[...]       # (tb, 128) f32
    o_ref[...] = out.astype(o_ref.dtype)                                  # bf16, unmasked 128-lane store


@functools.partial(jax.jit, static_argnames=("block_b",))
def _fused_slab(x, params, *, block_b=4096):
    """Returns the padded (Bp, 128) bf16 slab: [hidden | actor_logits | value | 0]."""
    B = x.shape[0]

    # Tile: multiple of 16 (bf16 sublane packing), big by default (>=2048 range),
    # capped at ~half the padded batch so the parallel axis has >=2 steps (v7x).
    b16 = _round_up(B, 16)
    half = max(16, ((b16 // 2) // 16) * 16)
    tb = max(16, min(block_b, half))
    tb = (tb // 16) * 16
    Bp = _round_up(B, tb)
    grid = (Bp // tb,)

    if Bp != B:                       # only pad when actually needed (no-op pass otherwise)
        x = jnp.pad(x, ((0, Bp - B), (0, 0)))

    w1 = params["w1"].astype(jnp.bfloat16)          # (20, 64)
    w2 = params["w2"].astype(jnp.bfloat16)          # (64, 128)
    w3 = params["w3"].astype(jnp.bfloat16)          # (128, 64)
    b1, b2, b3 = params["b1"], params["b2"], params["b3"]   # f32

    # Packed head matrix: identity pass-through + actor + critic, lane-padded to 128.
    wh = jnp.zeros((H3, H3_PAD), jnp.float32)
    wh = wh.at[:, :H3].set(jnp.eye(H3, dtype=jnp.float32))
    wh = wh.at[:, ACTOR_OFF:ACTOR_OFF + N_ACTIONS].set(params["wa"])
    wh = wh.at[:, CRITIC_OFF:CRITIC_OFF + 1].set(params["wc"])
    wh = wh.astype(jnp.bfloat16)
    bh = jnp.zeros((1, H3_PAD), jnp.float32)
    bh = bh.at[:, ACTOR_OFF:ACTOR_OFF + N_ACTIONS].set(params["ba"])
    bh = bh.at[:, CRITIC_OFF:CRITIC_OFF + 1].set(params["bc"])

    in_specs = [
        pl.BlockSpec((tb, N_INPUT), lambda i: (i, 0)),     # x tile (f32, cast in kernel)
        pl.BlockSpec((N_INPUT, H1), lambda i: (0, 0)),     # w1 (resident)
        pl.BlockSpec((1, H1), lambda i: (0, 0)),           # b1
        pl.BlockSpec((H1, H2), lambda i: (0, 0)),          # w2
        pl.BlockSpec((1, H2), lambda i: (0, 0)),           # b2
        pl.BlockSpec((H2, H3), lambda i: (0, 0)),          # w3
        pl.BlockSpec((1, H3), lambda i: (0, 0)),           # b3
        pl.BlockSpec((H3, H3_PAD), lambda i: (0, 0)),      # packed heads
        pl.BlockSpec((1, H3_PAD), lambda i: (0, 0)),       # packed head bias
    ]
    out_spec = pl.BlockSpec((tb, H3_PAD), lambda i: (i, 0))

    weight_elems = N_INPUT * H1 + H1 * H2 + H2 * H3 + H3 * H3_PAD
    flops = 2 * Bp * weight_elems
    bytes_accessed = (
        Bp * N_INPUT * 4                 # x in (f32)
        + Bp * H3_PAD * 2                # out (bf16)
        + weight_elems * 2               # weights (bf16)
        + (H1 + H2 + H3 + H3_PAD) * 4    # biases (f32)
    )
    cost = pl.CostEstimate(flops=flops, transcendentals=0,
                           bytes_accessed=bytes_accessed)

    return pl.pallas_call(
        _mlp_kernel,
        out_shape=jax.ShapeDtypeStruct((Bp, H3_PAD), jnp.bfloat16),
        grid_spec=pltpu.PrefetchScalarGridSpec(
            num_scalar_prefetch=0,
            grid=grid,
            in_specs=in_specs,
            out_specs=out_spec,
        ),
        compiler_params=pltpu.CompilerParams(
            dimension_semantics=("parallel",)),
        cost_estimate=cost,
    )(x, w1, b1, w2, b2, w3, b3, wh, bh)


@functools.partial(jax.jit, static_argnames=("block_b",))
def actor_critic_forward(x, params, *, block_b=4096):
    """Matches ActorCritic.forward: (B, 20) f32 -> (B, 64) f32."""
    B = x.shape[0]
    slab = _fused_slab(x, params, block_b=block_b)
    return slab[:B, :H3].astype(jnp.float32)


@functools.partial(jax.jit, static_argnames=("block_b",))
def evaluate_actions(x, params, *, block_b=4096):
    """Matches ActorCritic.evaluate_actions: (softmax(actor(h)), critic(h))."""
    B = x.shape[0]
    slab = _fused_slab(x, params, block_b=block_b)
    logits = slab[:B, ACTOR_OFF:ACTOR_OFF + N_ACTIONS].astype(jnp.float32)
    value = slab[:B, CRITIC_OFF:CRITIC_OFF + 1].astype(jnp.float32)
    return jax.nn.softmax(logits, axis=-1), value


def init_params(key):
    """PyTorch-Linear-style init: U(-1/sqrt(fan_in), 1/sqrt(fan_in)).
    Weights stored transposed as (in_features, out_features)."""
    def linear(k, fan_in, fan_out):
        kw, kb = jax.random.split(k)
        bound = 1.0 / jnp.sqrt(fan_in)
        w = jax.random.uniform(kw, (fan_in, fan_out), jnp.float32, -bound, bound)
        b = jax.random.uniform(kb, (1, fan_out), jnp.float32, -bound, bound)
        return w, b

    k1, k2, k3, k4, k5 = jax.random.split(key, 5)
    w1, b1 = linear(k1, N_INPUT, H1)
    w2, b2 = linear(k2, H1, H2)
    w3, b3 = linear(k3, H2, H3)
    wa, ba = linear(k4, H3, N_ACTIONS)
    wc, bc = linear(k5, H3, 1)
    return {"w1": w1, "b1": b1, "w2": w2, "b2": b2, "w3": w3, "b3": b3,
            "wa": wa, "ba": ba, "wc": wc, "bc": bc}


def _reference_full(x, p, bf16=True):
    """Pure-JAX reference. bf16=True mirrors the kernel's operand precision."""
    cast = (lambda a: a.astype(jnp.bfloat16)) if bf16 else (lambda a: a)

    def lin(a, w, b):
        return jnp.dot(cast(a), cast(w), preferred_element_type=jnp.float32) + b

    h = jnp.maximum(lin(x, p["w1"], p["b1"]), 0.0)
    h = jnp.maximum(lin(h, p["w2"], p["b2"]), 0.0)
    h = jnp.maximum(lin(h, p["w3"], p["b3"]), 0.0)
    actor = lin(h, p["wa"], p["ba"])
    critic = lin(h, p["wc"], p["bc"])
    return h, actor, critic


if __name__ == "__main__":
    key = jax.random.PRNGKey(0)
    kp, kx1, kx2 = jax.random.split(key, 3)
    params = init_params(kp)

    # Small batch: exercises batch padding (8 -> 16 rows) and the K=20 matmul.
    B1 = 8
    x1 = jax.random.normal(kx1, (B1, N_INPUT), jnp.float32)
    out1 = jax.block_until_ready(actor_critic_forward(x1, params))
    assert out1.shape == (B1, H3) and out1.dtype == jnp.float32
    h_bf, a_bf, v_bf = _reference_full(x1, params, bf16=True)
    h_f32, _, _ = _reference_full(x1, params, bf16=False)
    assert jnp.allclose(out1, h_bf, atol=3e-2, rtol=3e-2), "mismatch vs bf16 reference"
    assert jnp.allclose(out1, h_f32, atol=1e-1, rtol=1e-1), "mismatch vs f32 reference"

    # Fused actor/critic heads (evaluate_actions semantics).
    probs1, val1 = jax.block_until_ready(evaluate_actions(x1, params))
    assert probs1.shape == (B1, N_ACTIONS) and val1.shape == (B1, 1)
    assert jnp.allclose(jnp.sum(probs1, axis=-1), 1.0, atol=1e-3)
    assert jnp.allclose(probs1, jax.nn.softmax(a_bf, axis=-1), atol=3e-2, rtol=3e-2)
    assert jnp.allclose(val1, v_bf, atol=3e-2, rtol=3e-2)

    # Ragged batch with a multi-step "parallel" grid (tb=16 -> 2 steps).
    B2 = 24
    x2 = jax.random.normal(kx2, (B2, N_INPUT), jnp.float32)
    out2 = jax.block_until_ready(actor_critic_forward(x2, params, block_b=16))
    assert out2.shape == (B2, H3)
    h2_bf, _, _ = _reference_full(x2, params, bf16=True)
    assert jnp.allclose(out2, h2_bf, atol=3e-2, rtol=3e-2), "mismatch vs bf16 reference (tiled)"

    # TODO(synk): the softmax of get_action_probs stays in plain JAX (it is outside
    # forward()); the fused kernel already emits the actor logits / critic value.
    print("KERNEL_OK")
</pallas_src>

<mosaic_0001>
module attributes {stable_mosaic.version = 11 : i64} {
  func.func @_mlp_kernel(%arg0: i32, %arg1: memref<16x20xf32, #tpu.memory_space<vmem>>, %arg2: memref<20x64xbf16, #tpu.memory_space<vmem>>, %arg3: memref<1x64xf32, #tpu.memory_space<vmem>>, %arg4: memref<64x128xbf16, #tpu.memory_space<vmem>>, %arg5: memref<1x128xf32, #tpu.memory_space<vmem>>, %arg6: memref<128x64xbf16, #tpu.memory_space<vmem>>, %arg7: memref<1x64xf32, #tpu.memory_space<vmem>>, %arg8: memref<64x128xbf16, #tpu.memory_space<vmem>>, %arg9: memref<1x128xf32, #tpu.memory_space<vmem>>, %arg10: memref<16x128xbf16, #tpu.memory_space<vmem>>) attributes {dimension_semantics = [#tpu.dimension_semantics<parallel>], iteration_bounds = array<i64: 1>, scalar_prefetch = 0 : i64, scratch_operands = 0 : i64, tpu.core_type = #tpu.core_type<tc>, window_params = [{transform_indices = @transform_0, window_bounds = array<i64: 16, 20>}, {pipeline_mode = #tpu.pipeline_mode<synchronous>, transform_indices = @transform_1, window_bounds = array<i64: 20, 64>}, {pipeline_mode = #tpu.pipeline_mode<synchronous>, transform_indices = @transform_2, window_bounds = array<i64: 1, 64>}, {pipeline_mode = #tpu.pipeline_mode<synchronous>, transform_indices = @transform_3, window_bounds = array<i64: 64, 128>}, {pipeline_mode = #tpu.pipeline_mode<synchronous>, transform_indices = @transform_4, window_bounds = array<i64: 1, 128>}, {pipeline_mode = #tpu.pipeline_mode<synchronous>, transform_indices = @transform_5, window_bounds = array<i64: 128, 64>}, {pipeline_mode = #tpu.pipeline_mode<synchronous>, transform_indices = @transform_6, window_bounds = array<i64: 1, 64>}, {pipeline_mode = #tpu.pipeline_mode<synchronous>, transform_indices = @transform_7, window_bounds = array<i64: 64, 128>}, {pipeline_mode = #tpu.pipeline_mode<synchronous>, transform_indices = @transform_8, window_bounds = array<i64: 1, 128>}, {transform_indices = @transform_9, window_bounds = array<i64: 16, 128>}]} {
    %c0 = arith.constant 0 : index
    %c0_0 = arith.constant 0 : index
    %0 = vector.load %arg1[%c0, %c0_0] : memref<16x20xf32, #tpu.memory_space<vmem>>, vector<16x20xf32>
    %1 = arith.truncf %0 : vector<16x20xf32> to vector<16x20xbf16>
    %c0_1 = arith.constant 0 : index
    %c0_2 = arith.constant 0 : index
    %2 = vector.load %arg2[%c0_1, %c0_2] : memref<20x64xbf16, #tpu.memory_space<vmem>>, vector<20x64xbf16>
    %cst = arith.constant dense<0.000000e+00> : vector<16x64xf32>
    %3 = tpu.matmul %1, %2, %cst {dimension_numbers = #tpu.dot_dimension_numbers<[1], [0], [0], [1], [0, 0, 1, 1], [], []>} : vector<16x20xbf16>, vector<20x64xbf16>, vector<16x64xf32> -> vector<16x64xf32>
    %c0_3 = arith.constant 0 : index
    %c0_4 = arith.constant 0 : index
    %4 = vector.load %arg3[%c0_3, %c0_4] : memref<1x64xf32, #tpu.memory_space<vmem>>, vector<1x64xf32>
    %5 = vector.broadcast %4 : vector<1x64xf32> to vector<16x64xf32>
    %6 = arith.addf %3, %5 : vector<16x64xf32>
    %cst_5 = arith.constant 0.000000e+00 : f32
    %7 = vector.broadcast %cst_5 : f32 to vector<16x64xf32>
    %8 = arith.maximumf %6, %7 : vector<16x64xf32>
    %9 = arith.truncf %8 : vector<16x64xf32> to vector<16x64xbf16>
    %c0_6 = arith.constant 0 : index
    %c0_7 = arith.constant 0 : index
    %10 = vector.load %arg4[%c0_6, %c0_7] : memref<64x128xbf16, #tpu.memory_space<vmem>>, vector<64x128xbf16>
    %cst_8 = arith.constant dense<0.000000e+00> : vector<16x128xf32>
    %11 = tpu.matmul %9, %10, %cst_8 {dimension_numbers = #tpu.dot_dimension_numbers<[1], [0], [0], [1], [0, 0, 1, 1], [], []>} : vector<16x64xbf16>, vector<64x128xbf16>, vector<16x128xf32> -> vector<16x128xf32>
    %c0_9 = arith.constant 0 : index
    %c0_10 = arith.constant 0 : index
    %12 = vector.load %arg5[%c0_9, %c0_10] : memref<1x128xf32, #tpu.memory_space<vmem>>, vector<1x128xf32>
    %13 = vector.broadcast %12 : vector<1x128xf32> to vector<16x128xf32>
    %14 = arith.addf %11, %13 : vector<16x128xf32>
    %cst_11 = arith.constant 0.000000e+00 : f32
    %15 = vector.broadcast %cst_11 : f32 to vector<16x128xf32>
    %16 = arith.maximumf %14, %15 : vector<16x128xf32>
    %17 = arith.truncf %16 : vector<16x128xf32> to vector<16x128xbf16>
    %c0_12 = arith.constant 0 : index
    %c0_13 = arith.constant 0 : index
    %18 = vector.load %arg6[%c0_12, %c0_13] : memref<128x64xbf16, #tpu.memory_space<vmem>>, vector<128x64xbf16>
    %cst_14 = arith.constant dense<0.000000e+00> : vector<16x64xf32>
    %19 = tpu.matmul %17, %18, %cst_14 {dimension_numbers = #tpu.dot_dimension_numbers<[1], [0], [0], [1], [0, 0, 1, 1], [], []>} : vector<16x128xbf16>, vector<128x64xbf16>, vector<16x64xf32> -> vector<16x64xf32>
    %c0_15 = arith.constant 0 : index
    %c0_16 = arith.constant 0 : index
    %20 = vector.load %arg7[%c0_15, %c0_16] : memref<1x64xf32, #tpu.memory_space<vmem>>, vector<1x64xf32>
    %21 = vector.broadcast %20 : vector<1x64xf32> to vector<16x64xf32>
    %22 = arith.addf %19, %21 : vector<16x64xf32>
    %cst_17 = arith.constant 0.000000e+00 : f32
    %23 = vector.broadcast %cst_17 : f32 to vector<16x64xf32>
    %24 = arith.maximumf %22, %23 : vector<16x64xf32>
    %25 = arith.truncf %24 : vector<16x64xf32> to vector<16x64xbf16>
    %c0_18 = arith.constant 0 : index
    %c0_19 = arith.constant 0 : index
    %26 = vector.load %arg8[%c0_18, %c0_19] : memref<64x128xbf16, #tpu.memory_space<vmem>>, vector<64x128xbf16>
    %cst_20 = arith.constant dense<0.000000e+00> : vector<16x128xf32>
    %27 = tpu.matmul %25, %26, %cst_20 {dimension_numbers = #tpu.dot_dimension_numbers<[1], [0], [0], [1], [0, 0, 1, 1], [], []>} : vector<16x64xbf16>, vector<64x128xbf16>, vector<16x128xf32> -> vector<16x128xf32>
    %c0_21 = arith.constant 0 : index
    %c0_22 = arith.constant 0 : index
    %28 = vector.load %arg9[%c0_21, %c0_22] : memref<1x128xf32, #tpu.memory_space<vmem>>, vector<1x128xf32>
    %29 = vector.broadcast %28 : vector<1x128xf32> to vector<16x128xf32>
    %30 = arith.addf %27, %29 : vector<16x128xf32>
    %31 = arith.truncf %30 : vector<16x128xf32> to vector<16x128xbf16>
    %c0_23 = arith.constant 0 : index
    %c0_24 = arith.constant 0 : index
    %32 = vector.load %arg10[%c0_23, %c0_24] : memref<16x128xbf16, #tpu.memory_space<vmem>>, vector<16x128xbf16>
    tpu.vector_store %arg10[%c0_23, %c0_24], %31 {strides = array<i32>} : memref<16x128xbf16, #tpu.memory_space<vmem>>, vector<16x128xbf16>,
    return
  }
  func.func @transform_0(%arg0: i32) -> (i32, i32) {
    %c0_i32 = arith.constant 0 : i32
    %c0_i32_0 = arith.constant 0 : i32
    return %arg0, %c0_i32 : i32, i32
  }
  func.func @transform_1(%arg0: i32) -> (i32, i32) {
    %c0_i32 = arith.constant 0 : i32
    %c0_i32_0 = arith.constant 0 : i32
    %c0_i32_1 = arith.constant 0 : i32
    return %c0_i32, %c0_i32_0 : i32, i32
  }
  func.func @transform_2(%arg0: i32) -> (i32, i32) {
    %c0_i32 = arith.constant 0 : i32
    %c0_i32_0 = arith.constant 0 : i32
    %c0_i32_1 = arith.constant 0 : i32
    return %c0_i32, %c0_i32_0 : i32, i32
  }
  func.func @transform_3(%arg0: i32) -> (i32, i32) {
    %c0_i32 = arith.constant 0 : i32
    %c0_i32_0 = arith.constant 0 : i32
    %c0_i32_1 = arith.constant 0 : i32
    return %c0_i32, %c0_i32_0 : i32, i32
  }
  func.func @transform_4(%arg0: i32) -> (i32, i32) {
    %c0_i32 = arith.constant 0 : i32
    %c0_i32_0 = arith.constant 0 : i32
    %c0_i32_1 = arith.constant 0 : i32
    return %c0_i32, %c0_i32_0 : i32, i32
  }
  func.func @transform_5(%arg0: i32) -> (i32, i32) {
    %c0_i32 = arith.constant 0 : i32
    %c0_i32_0 = arith.constant 0 : i32
    %c0_i32_1 = arith.constant 0 : i32
    return %c0_i32, %c0_i32_0 : i32, i32
  }
  func.func @transform_6(%arg0: i32) -> (i32, i32) {
    %c0_i32 = arith.constant 0 : i32
    %c0_i32_0 = arith.constant 0 : i32
    %c0_i32_1 = arith.constant 0 : i32
    return %c0_i32, %c0_i32_0 : i32, i32
  }
  func.func @transform_7(%arg0: i32) -> (i32, i32) {
    %c0_i32 = arith.constant 0 : i32
    %c0_i32_0 = arith.constant 0 : i32
    %c0_i32_1 = arith.constant 0 : i32
    return %c0_i32, %c0_i32_0 : i32, i32
  }
  func.func @transform_8(%arg0: i32) -> (i32, i32) {
    %c0_i32 = arith.constant 0 : i32
    %c0_i32_0 = arith.constant 0 : i32
    %c0_i32_1 = arith.constant 0 : i32
    return %c0_i32, %c0_i32_0 : i32, i32
  }
  func.func @transform_9(%arg0: i32) -> (i32, i32) {
    %c0_i32 = arith.constant 0 : i32
    %c0_i32_0 = arith.constant 0 : i32
    return %arg0, %c0_i32 : i32, i32
  }
}

</mosaic_0001>

<bundles_post_ra>
// kernel: _fused_slab.1
= control target key start
LH: loop header
LB: loop body
LE: loop exit
PB: predicated region body
PF: predicated region fallthrough
CT: control target
= control target key end

     0   :  { %v574_v1 = vmov 0.0   ;;  %vm60_vm0 = vcmask 1041408   ;;  %vm575_vm1 = vmmov 0   ;;  %vm56_vm2 = vcmask 162816   ;;  %s741_s0 = inlined_call_operand.vmem [shape: f32[16,20], index: 0, kind: input, shape index: {}]   ;;  %s742_s1 = inlined_call_operand.vmem [shape: bf16[20,64], index: 1, kind: input, shape index: {}]   ;;  %s743_s2 = inlined_call_operand.vmem [shape: f32[1,64], index: 2, kind: input, shape index: {}]   ;;  %s744_s3 = inlined_call_operand.vmem [shape: bf16[64,128], index: 3, kind: input, shape index: {}]   ;;  %s745_s4 = inlined_call_operand.vmem [shape: f32[1,128], index: 4, kind: input, shape index: {}]   ;;  %s746_s5 = inlined_call_operand.vmem [shape: bf16[128,64], index: 5, kind: input, shape index: {}]   ;;  %s747_s6 = inlined_call_operand.vmem [shape: f32[1,64], index: 6, kind: input, shape index: {}]   ;;  %s748_s7 = inlined_call_operand.vmem [shape: bf16[64,128], index: 7, kind: input, shape index: {}]   ;;  %s749_s8 = inlined_call_operand.vmem [shape: f32[1,128], index: 8, kind: input, shape index: {}]   ;;  %s750_s9 = inlined_call_operand.hbm [shape: bf16[16,128], index: 9, kind: output, shape index: {}]  }
   0x1   :  { %v532_v0 = vld [vmem:[%s742_s1] sm:$0xff]   ;;  %475 = vmatprep.subr.bf16.mxu0 %v574_v1  ;;  %v533_v2 = vld [vmem:[%s742_s1 + $0x8] ss:$0 sps:$4 sm:$0x33]   ;;  %483 = vmatprep.subr.bf16.mxu1 %v574_v1 }
   0x2   :  { %476 = vmatpush3.bf16.msra.mxu0 %v532_v0  ;;  %v34_v3 = vld [vmem:[%s741_s0] sm:$0xff]  ;;  %v35_v4 = vld [vmem:[%s741_s0 + $0x8] sm:$0xff]  ;;  %v62_v5 = vsel %vm60_vm0, %v533_v2, 0  ;;  %479 = vmatprep.mubr.msk.bf16.mxu0 %vm575_vm1, %v574_v1 }
   0x3   :  { %477 = vmatprep.subr.bf16.mxu0 %v574_v1  ;;  %v534_v6 = vld [vmem:[%s744_s3] sm:$0xff]   ;;  %v535_v7 = vld [vmem:[%s744_s3 + $0x8] sm:$0xff]   ;;  %491 = vmatprep.mubr.msk.bf16.mxu1 %vm575_vm1, %v574_v1  ;;  %v36_v8 = vpack.c.bf16 %v35_v4, %v34_v3 }
   0x4   :  { %484 = vmatpush3.bf16.msra.mxu1 %v534_v6 }
   0x5   :  { %485 = vmatprep.subr.bf16.mxu1 %v574_v1 }
   0x6   :  { %478 = vmatpush3.bf16.msra.mxu0 %v62_v5 }
   0x7   :  { %495 = vmatprep.subr.bf16.mxu0 %v574_v1 }
   0x8   :  { %486 = vmatpush3.bf16.msra.mxu1 %v535_v7 }
   0x9   :  { %480 = vmatmul.mubr.msk.bf16.vlgmr.msra.gmra.mrb[0].mxu0 %vm56_vm2, %v36_v8  ;;  %487 = vmatprep.subr.bf16.mxu1 %v574_v1 }
   0xa   :  { %511 = vmatprep.mubr.msk.bf16.mxu0 %vm575_vm1, %v574_v1 }
   0xb   :  { %14 = vsyncpa [#allocation3], 0  ;;  %v536_v9 = vld [vmem:[%s744_s3 + $0x10] sm:$0xff]   ;;  %v537_v10 = vld [vmem:[%s744_s3 + $0x18] sm:$0xff]   ;;  %vm147_vm3 = vcmask 523264  }
   0xc   :  { %488 = vmatpush3.bf16.msra.mxu1 %v536_v9  ;;  %v538_v11 = vld [vmem:[%s746_s5] sm:$0xff]   ;;  %v539_v12 = vld [vmem:[%s746_s5 + $0x8] sm:$0xff]   ;;  %v540_v13 = vld [vmem:[%s746_s5 + $0x10] sm:$0xff]  }
   0xd   :  { %489 = vmatprep.subr.bf16.mxu1 %v574_v1  ;;  %496 = vmatpush3.bf16.msra.mxu0 %v538_v11  ;;  %v541_v14 = vld [vmem:[%s746_s5 + $0x18] sm:$0xff]   ;;  %v542_v15 = vld [vmem:[%s746_s5 + $0x20] sm:$0xff]   ;;  %v543_v16 = vld [vmem:[%s746_s5 + $0x28] sm:$0xff]  }
   0xe   :  { %497 = vmatprep.subr.bf16.mxu0 %v574_v1  ;;  %v419_v17 = vld [vmem:[%s743_s2] ss:$0 sm:$0xff]  ;;  %v544_v27 = vld [vmem:[%s746_s5 + $0x30] sm:$0xff]   ;;  %v545_v28 = vld [vmem:[%s746_s5 + $0x38] sm:$0xff]  }
   0xf   :  { %v546_v29 = vld [vmem:[%s748_s7] sm:$0xff]   ;;  %v547_v30 = vld [vmem:[%s748_s7 + $0x8] sm:$0xff]   ;;  %v548_v41 = vld [vmem:[%s748_s7 + $0x10] sm:$0xff]  }
  0x10   :  { %490 = vmatpush3.bf16.msra.mxu1 %v537_v10  ;;  %v423_v31 = vld [vmem:[%s745_s4] ss:$0 sm:$0xff]  ;;  %v549_v42 = vld [vmem:[%s748_s7 + $0x18] sm:$0xff]   ;;  %s576_s7 = smov [#allocation2]  }
  0x11   :  { %515 = vmatprep.subr.bf16.mxu1 %v574_v1  ;;  %498 = vmatpush3.bf16.msra.mxu0 %v539_v12  ;;  %v429_v43 = vld [vmem:[%s747_s6] ss:$0 sm:$0xff]  ;;  %s408_s28 = sshll.u32 %s576_s7, 4  ;;  %s409_s28 = int_to_ptr.vmem [resolvable:$true] %s408_s28 }
  0x12   :  { %499 = vmatprep.subr.bf16.mxu0 %v574_v1  ;;  %v438_v53 = vld [vmem:[%s749_s8] ss:$0 sm:$0xff]  ;;  %s550_s6 = scalar_lea.vmem %s409_s28, 128  ;;  %p555_p1 = scmp.lt.s32.totalorder %s409_s28, %s409_s28 }
  0x13   :  { %p551_p0 = scmp.ne.s32.totalorder %s409_s28, %s550_s6  ;;  %p556_p2 = scmp.lt.s32.totalorder %s550_s6, %s550_s6 }
  0x15   :  { %500 = vmatpush3.bf16.msra.mxu0 %v540_v13  ;;  %p557_p3 = por %p556_p2, %p555_p1 }
  0x16   :  { %501 = vmatprep.subr.bf16.mxu0 %v574_v1 }
  0x17   :  { %p558_p4 = pnand %p557_p3, %p551_p0 }
  0x19   :  { %502 = vmatpush3.bf16.msra.mxu0 %v541_v14 }
  0x1a   :  { %503 = vmatprep.subr.bf16.mxu0 %v574_v1 }
  0x1d   :  { %504 = vmatpush3.bf16.msra.mxu0 %v542_v15 }
  0x1e   :  { %505 = vmatprep.subr.bf16.mxu0 %v574_v1 }
  0x21   :  { %506 = vmatpush3.bf16.msra.mxu0 %v543_v16 }
  0x22   :  { %507 = vmatprep.subr.bf16.mxu0 %v574_v1 }
  0x25   :  { %508 = vmatpush3.bf16.msra.mxu0 %v544_v27 }
  0x26   :  { %509 = vmatprep.subr.bf16.mxu0 %v574_v1 }
  0x29   :  { %510 = vmatpush3.bf16.msra.mxu0 %v545_v28 }
  0xdc   :  { %v98_v18 = vpop.f32.mrb[0].mxu0 }
  0xdd   :  { %v99_v19 = vadd.f32 %v419_v17, %v98_v18  ;;  %v481_v20 = vpop.f32.mrb[1].mxu0 }
  0xde   :  { %v101_v21 = vpop.f32.mrb[2].mxu0 }
  0xdf   :  { %v102_v22 = vadd.f32 %v419_v17, %v101_v21  ;;  %v482_v23 = vpop.f32.mrb[3].mxu0  ;;  %v105_v24 = vmax.f32 %v99_v19, 0.0 }
  0xe1   :  { %v106_v25 = vmax.f32 %v102_v22, 0.0 }
  0xe3   :  { %v107_v26 = vpack.c.bf16 %v106_v25, %v105_v24 }
  0xe5   :  { %492 = vmatmul.mubr.msk.bf16.vlgmr.msra.gmra.mrb[0].mxu1 %vm147_vm3, %v107_v26 }
  0xe6   :  { %523 = vmatprep.mubr.msk.bf16.mxu1 %vm575_vm1, %v574_v1  ;;  %516 = vmatpush3.bf16.msra.mxu1 %v546_v29 }
  0xe7   :  { %517 = vmatprep.subr.bf16.mxu1 %v574_v1 }
  0xea   :  { %518 = vmatpush3.bf16.msra.mxu1 %v547_v30 }
  0xeb   :  { %519 = vmatprep.subr.bf16.mxu1 %v574_v1 }
  0xee   :  { %520 = vmatpush3.bf16.msra.mxu1 %v548_v41 }
  0xef   :  { %521 = vmatprep.subr.bf16.mxu1 %v574_v1 }
  0xf2   :  { %522 = vmatpush3.bf16.msra.mxu1 %v549_v42 }
 0x1b8   :  { %v185_v32 = vpop.f32.mrb[0].mxu1 }
 0x1b9   :  { %v186_v33 = vadd.f32 %v423_v31, %v185_v32  ;;  %v493_v34 = vpop.f32.mrb[1].mxu1 }
 0x1ba   :  { %v188_v35 = vpop.f32.mrb[2].mxu1 }
 0x1bb   :  { %v189_v36 = vadd.f32 %v423_v31, %v188_v35  ;;  %v494_v37 = vpop.f32.mrb[3].mxu1  ;;  %v192_v38 = vmax.f32 %v186_v33, 0.0 }
 0x1bd   :  { %v193_v39 = vmax.f32 %v189_v36, 0.0 }
 0x1bf   :  { %v194_v40 = vpack.c.bf16 %v193_v39, %v192_v38 }
 0x1c1   :  { %512 = vmatmul.mubr.bf16.vlgmr.msra.gmra.mrb[4].mxu0 %v194_v40 }
 0x294   :  { %v300_v44 = vpop.f32.mrb[4].mxu0 }
 0x295   :  { %v301_v45 = vadd.f32 %v429_v43, %v300_v44  ;;  %v513_v46 = vpop.f32.mrb[5].mxu0 }
 0x296   :  { %v303_v47 = vpop.f32.mrb[6].mxu0 }
 0x297   :  { %v304_v48 = vadd.f32 %v429_v43, %v303_v47  ;;  %v514_v49 = vpop.f32.mrb[7].mxu0  ;;  %v307_v50 = vmax.f32 %v301_v45, 0.0 }
 0x299   :  { %v308_v51 = vmax.f32 %v304_v48, 0.0 }
 0x29b   :  { %v309_v52 = vpack.c.bf16 %v308_v51, %v307_v50 }
 0x29d   :  { %524 = vmatmul.mubr.msk.bf16.vlgmr.msra.gmra.mrb[4].mxu1 %vm147_vm3, %v309_v52 }
 0x370   :  { %v386_v54 = vpop.f32.mrb[4].mxu1 }
 0x371   :  { %v525_v55 = vpop.f32.mrb[5].mxu1  ;;  %v387_v57 = vadd.f32 %v438_v53, %v386_v54 }
 0x372   :  { %v389_v56 = vpop.f32.mrb[6].mxu1 }
 0x373   :  { %v390_v58 = vadd.f32 %v438_v53, %v389_v56  ;;  %v526_v59 = vpop.f32.mrb[7].mxu1 }
 0x375   :  { %v451_v60 = vpack.c.bf16 %v390_v58, %v387_v57 }
 0x377   :  { %452 = vst [vmem:[#allocation2] sm:$0xff] %v451_v60  }
 0x378   :  { %561 = shalt.err (!%p558_p4)
}
 0x379   :  { %s562_s29 = scalar_lea.hbm %s750_s9, 128 }
 0x37a   :  { %p563_p5 = scmp.ne.s32.totalorder %s750_s9, %s562_s29  ;;  %p566_p6 = scmp.lt.u32.totalorder %s562_s29, %s750_s9 }
 0x37c   :  { %p568_p7 = pnand %p566_p6, %p563_p5 }
 0x37e   :  { %571 = shalt.err (!%p568_p7)
}
 0x37f   :  { %s577_s13 = smov 64   ;;  %s578_s14 = smov 4  }
 0x380   :  { %414 = dma.vmem_to_hbm [thread:$0]  %s409_s28, 128, %s750_s9, [#allocation3], %s577_s13, %s577_s13, %s578_s14  }
 0x381   :  { %572 = dma.done.wait [#allocation3], 128  }
 0x382   :  { %573 = vsyncadd [#allocation3], 4294967168 }
 0x383   :  { %418 = vsyncpa [#allocation3], 1 }

</bundles_post_ra>
